<compile_context>
chip_gen: v6e
topology: v6e:2x2x1
jax: 0.10.0
libtpu: 0.0.40
codegen_flags: <defaults>
</compile_context>

<pallas_src>
import jax
import jax.numpy as jnp
from jax.experimental import pallas as pl
from jax.experimental.pallas import tpu as pltpu


def _reparameterize_kernel(x_ref, eps_ref, w_ref, b_ref, out_ref):
    """Fused (linear ++ linear) + exp + affine-noise kernel.

    x_ref:   (TB, H)      VMEM
    eps_ref: (TB, Lp)     VMEM   standard-normal noise
    w_ref:   (H, 2*Lp)    VMEM   [:, :Lp] -> mean weights, [:, Lp:] -> logvar
    b_ref:   (1, 2*Lp)    VMEM
    out_ref: (3, TB, Lp)  VMEM   [0]=z [1]=mean [2]=logvar
    """
    lp = out_ref.shape[2]

    # Single fused projection on the MXU (f32 accumulation), one bias add.
    y = jnp.dot(x_ref[...], w_ref[...],
                preferred_element_type=jnp.float32) + b_ref[...]
    mean = y[:, :lp]            # lane-tile-aligned slices (lp is a multiple of 128)
    logvar = y[:, lp:]

    std = jnp.exp(0.5 * logvar)                 # EUP
    z = eps_ref[...] * std + mean               # VPU

    # Lane-dense stores (last dim = Lp >= 128).
    out_ref[0] = z
    out_ref[1] = mean
    out_ref[2] = logvar


def pack_reparam_params(w_mean, b_mean, w_logvar, b_logvar):
    """Concatenate + lane-pad the two projections ONCE (parameter-load time).

    w_*: (H, L)  (PyTorch (L, H) weight pre-transposed);  b_*: (1, L) or (L,).
    Returns (w_cat (H, 2*Lp), b_cat (1, 2*Lp), L).
    """
    f32 = jnp.float32
    H, L = w_mean.shape
    Lp = 128 * pl.cdiv(L, 128)

    w_cat = jnp.zeros((H, 2 * Lp), f32)
    w_cat = w_cat.at[:, :L].set(w_mean.astype(f32))
    w_cat = w_cat.at[:, Lp:Lp + L].set(w_logvar.astype(f32))

    b_cat = jnp.zeros((1, 2 * Lp), f32)
    b_cat = b_cat.at[:, :L].set(jnp.reshape(b_mean, (1, L)).astype(f32))
    b_cat = b_cat.at[:, Lp:Lp + L].set(jnp.reshape(b_logvar, (1, L)).astype(f32))
    return w_cat, b_cat, L


def reparameterize(latent, w_cat, b_cat, L, eps):
    """latent: (B, H); w_cat/b_cat from pack_reparam_params; eps: (B, L) ~ N(0,1).

    Returns (z, mean, logvar), each (B, L).  z is in latent.dtype.
    """
    f32 = jnp.float32
    B, H = latent.shape
    W2 = w_cat.shape[1]
    Lp = W2 // 2

    # Batch tile: f32 sublane aligned, capped at 256 (v5e VMEM / roofline),
    # and chosen so that B >= 16 yields at least 2 grid tiles (v7x megacore).
    TB = min(256, 8 * pl.cdiv(B, 16))
    Bp = TB * pl.cdiv(B, TB)

    x_p = jnp.pad(latent.astype(f32), ((0, Bp - B), (0, 0)))
    eps_p = jnp.pad(eps.astype(f32), ((0, Bp - B), (0, Lp - L)))

    # Explicit VMEM budget: double-buffered x/eps/out tiles + resident weights,
    # with 2x headroom; clamped so the same request stays legal on v7x (64 MiB).
    needed = 4 * (2 * TB * H + 2 * TB * Lp + 2 * H * W2 + 2 * W2
                  + 2 * 3 * TB * Lp)
    vmem_limit = int(min(64 * 2**20, max(2 * needed, 4 * 2**20)))

    slab = pl.pallas_call(
        _reparameterize_kernel,
        out_shape=jax.ShapeDtypeStruct((3, Bp, Lp), f32),
        grid=(Bp // TB,),
        in_specs=[
            pl.BlockSpec((TB, H), lambda i: (i, 0)),
            pl.BlockSpec((TB, Lp), lambda i: (i, 0)),
            pl.BlockSpec((H, W2), lambda i: (0, 0)),   # resident weights
            pl.BlockSpec((1, W2), lambda i: (0, 0)),   # resident bias
        ],
        out_specs=pl.BlockSpec((3, TB, Lp), lambda i: (0, i, 0)),
        compiler_params=pltpu.CompilerParams(
            dimension_semantics=("parallel",),
            vmem_limit_bytes=vmem_limit),
    )(x_p, eps_p, w_cat, b_cat)

    z = slab[0, :B, :L].astype(latent.dtype)
    mean = slab[1, :B, :L]
    logvar = slab[2, :B, :L]
    return z, mean, logvar


def xavier_uniform(key, fan_in, fan_out, dtype=jnp.float32):
    limit = (6.0 / (fan_in + fan_out)) ** 0.5
    # PyTorch weight is (out, in); we store it transposed as (in, out).
    return jax.random.uniform(key, (fan_in, fan_out), dtype, -limit, limit)


if __name__ == "__main__":
    hidden_size = 32
    latent_length = 8
    batch = 2

    key = jax.random.PRNGKey(0)
    k_x, k_wm, k_bm, k_wlv, k_blv, k_eps = jax.random.split(key, 6)

    # Deterministic parameter init (matches module shapes / xavier_uniform_).
    w_mean = xavier_uniform(k_wm, hidden_size, latent_length)
    w_logvar = xavier_uniform(k_wlv, hidden_size, latent_length)
    bound = 1.0 / (hidden_size ** 0.5)     # PyTorch Linear default bias init
    b_mean = jax.random.uniform(k_bm, (1, latent_length), jnp.float32, -bound, bound)
    b_logvar = jax.random.uniform(k_blv, (1, latent_length), jnp.float32, -bound, bound)

    # Pack / pad the projection parameters once (parameter-load time).
    w_cat, b_cat, L = pack_reparam_params(w_mean, b_mean, w_logvar, b_logvar)

    # Example input (encoder last hidden state) and standard-normal noise
    # (the torch.randn_like equivalent, drawn outside the kernel).
    latent_in = jax.random.normal(k_x, (batch, hidden_size), jnp.float32)
    eps = jax.random.normal(k_eps, (batch, latent_length), jnp.float32)

    z, mean, logvar = reparameterize(latent_in, w_cat, b_cat, L, eps)
    jax.block_until_ready(z)

    # Reference check in plain JAX with the same eps.
    mean_ref = latent_in @ w_mean + b_mean
    logvar_ref = latent_in @ w_logvar + b_logvar
    z_ref = eps * jnp.exp(0.5 * logvar_ref) + mean_ref

    assert jnp.allclose(mean, mean_ref, atol=1e-4, rtol=1e-4)
    assert jnp.allclose(logvar, logvar_ref, atol=1e-4, rtol=1e-4)
    assert jnp.allclose(z, z_ref, atol=1e-4, rtol=1e-4)
    assert bool(jnp.all(jnp.isfinite(z)))

    print("KERNEL_OK")
</pallas_src>

<mosaic_0001>
module attributes {stable_mosaic.version = 11 : i64} {
  func.func @_reparameterize_kernel(%arg0: i32, %arg1: memref<8x32xf32, #tpu.memory_space<vmem>>, %arg2: memref<8x128xf32, #tpu.memory_space<vmem>>, %arg3: memref<32x256xf32, #tpu.memory_space<vmem>>, %arg4: memref<1x256xf32, #tpu.memory_space<vmem>>, %arg5: memref<3x8x128xf32, #tpu.memory_space<vmem>>) attributes {dimension_semantics = [#tpu.dimension_semantics<parallel>], iteration_bounds = array<i64: 1>, scalar_prefetch = 0 : i64, scratch_operands = 0 : i64, tpu.core_type = #tpu.core_type<tc>, window_params = [{transform_indices = @transform_0, window_bounds = array<i64: 8, 32>}, {transform_indices = @transform_1, window_bounds = array<i64: 8, 128>}, {pipeline_mode = #tpu.pipeline_mode<synchronous>, transform_indices = @transform_2, window_bounds = array<i64: 32, 256>}, {pipeline_mode = #tpu.pipeline_mode<synchronous>, transform_indices = @transform_3, window_bounds = array<i64: 1, 256>}, {transform_indices = @transform_4, window_bounds = array<i64: 3, 8, 128>}]} {
    %c0 = arith.constant 0 : index
    %c0_0 = arith.constant 0 : index
    %0 = vector.load %arg1[%c0, %c0_0] : memref<8x32xf32, #tpu.memory_space<vmem>>, vector<8x32xf32>
    %c0_1 = arith.constant 0 : index
    %c0_2 = arith.constant 0 : index
    %1 = vector.load %arg3[%c0_1, %c0_2] : memref<32x256xf32, #tpu.memory_space<vmem>>, vector<32x256xf32>
    %cst = arith.constant dense<0.000000e+00> : vector<8x256xf32>
    %2 = tpu.matmul %0, %1, %cst {dimension_numbers = #tpu.dot_dimension_numbers<[1], [0], [0], [1], [0, 0, 1, 1], [], []>} : vector<8x32xf32>, vector<32x256xf32>, vector<8x256xf32> -> vector<8x256xf32>
    %c0_3 = arith.constant 0 : index
    %c0_4 = arith.constant 0 : index
    %3 = vector.load %arg4[%c0_3, %c0_4] : memref<1x256xf32, #tpu.memory_space<vmem>>, vector<1x256xf32>
    %4 = vector.broadcast %3 : vector<1x256xf32> to vector<8x256xf32>
    %5 = arith.addf %2, %4 : vector<8x256xf32>
    %6 = vector.extract_strided_slice %5 {offsets = [0, 0], sizes = [8, 128], strides = [1, 1]} : vector<8x256xf32> to vector<8x128xf32>
    %7 = vector.extract_strided_slice %5 {offsets = [0, 128], sizes = [8, 128], strides = [1, 1]} : vector<8x256xf32> to vector<8x128xf32>
    %cst_5 = arith.constant 5.000000e-01 : f32
    %8 = vector.broadcast %cst_5 : f32 to vector<8x128xf32>
    %9 = arith.mulf %8, %7 : vector<8x128xf32>
    %10 = math.exp %9 : vector<8x128xf32>
    %c0_6 = arith.constant 0 : index
    %c0_7 = arith.constant 0 : index
    %11 = vector.load %arg2[%c0_6, %c0_7] : memref<8x128xf32, #tpu.memory_space<vmem>>, vector<8x128xf32>
    %12 = arith.mulf %11, %10 : vector<8x128xf32>
    %13 = arith.addf %12, %6 : vector<8x128xf32>
    %c0_8 = arith.constant 0 : index
    %c0_9 = arith.constant 0 : index
    %c0_10 = arith.constant 0 : index
    %14 = vector.load %arg5[%c0_8, %c0_9, %c0_10] : memref<3x8x128xf32, #tpu.memory_space<vmem>>, vector<1x8x128xf32>
    %15 = vector.shape_cast %14 : vector<1x8x128xf32> to vector<8x128xf32>
    %16 = vector.shape_cast %13 : vector<8x128xf32> to vector<1x8x128xf32>
    tpu.vector_store %arg5[%c0_8, %c0_9, %c0_10], %16 {strides = array<i32>} : memref<3x8x128xf32, #tpu.memory_space<vmem>>, vector<1x8x128xf32>,
    %c1 = arith.constant 1 : index
    %c0_11 = arith.constant 0 : index
    %c0_12 = arith.constant 0 : index
    %17 = vector.load %arg5[%c1, %c0_11, %c0_12] : memref<3x8x128xf32, #tpu.memory_space<vmem>>, vector<1x8x128xf32>
    %18 = vector.shape_cast %17 : vector<1x8x128xf32> to vector<8x128xf32>
    %19 = vector.shape_cast %6 : vector<8x128xf32> to vector<1x8x128xf32>
    tpu.vector_store %arg5[%c1, %c0_11, %c0_12], %19 {strides = array<i32>} : memref<3x8x128xf32, #tpu.memory_space<vmem>>, vector<1x8x128xf32>,
    %c2 = arith.constant 2 : index
    %c0_13 = arith.constant 0 : index
    %c0_14 = arith.constant 0 : index
    %20 = vector.load %arg5[%c2, %c0_13, %c0_14] : memref<3x8x128xf32, #tpu.memory_space<vmem>>, vector<1x8x128xf32>
    %21 = vector.shape_cast %20 : vector<1x8x128xf32> to vector<8x128xf32>
    %22 = vector.shape_cast %7 : vector<8x128xf32> to vector<1x8x128xf32>
    tpu.vector_store %arg5[%c2, %c0_13, %c0_14], %22 {strides = array<i32>} : memref<3x8x128xf32, #tpu.memory_space<vmem>>, vector<1x8x128xf32>,
    return
  }
  func.func @transform_0(%arg0: i32) -> (i32, i32) {
    %c0_i32 = arith.constant 0 : i32
    %c0_i32_0 = arith.constant 0 : i32
    return %arg0, %c0_i32 : i32, i32
  }
  func.func @transform_1(%arg0: i32) -> (i32, i32) {
    %c0_i32 = arith.constant 0 : i32
    %c0_i32_0 = arith.constant 0 : i32
    return %arg0, %c0_i32 : i32, i32
  }
  func.func @transform_2(%arg0: i32) -> (i32, i32) {
    %c0_i32 = arith.constant 0 : i32
    %c0_i32_0 = arith.constant 0 : i32
    %c0_i32_1 = arith.constant 0 : i32
    return %c0_i32, %c0_i32_0 : i32, i32
  }
  func.func @transform_3(%arg0: i32) -> (i32, i32) {
    %c0_i32 = arith.constant 0 : i32
    %c0_i32_0 = arith.constant 0 : i32
    %c0_i32_1 = arith.constant 0 : i32
    return %c0_i32, %c0_i32_0 : i32, i32
  }
  func.func @transform_4(%arg0: i32) -> (i32, i32, i32) {
    %c0_i32 = arith.constant 0 : i32
    %c0_i32_0 = arith.constant 0 : i32
    %c0_i32_1 = arith.constant 0 : i32
    return %c0_i32, %arg0, %c0_i32_0 : i32, i32, i32
  }
}

</mosaic_0001>

<bundles_post_ra>
// kernel: tpu_custom_call.1
= control target key start
LH: loop header
LB: loop body
LE: loop exit
PB: predicated region body
PF: predicated region fallthrough
CT: control target
= control target key end

     0   :  { %9 = vsyncpa [#allocation3], 0  ;;  %s327_s0 = inlined_call_operand.hbm [shape: f32[8,32], index: 0, kind: input, shape index: {}]   ;;  %s328_s1 = inlined_call_operand.hbm [shape: f32[8,128], index: 1, kind: input, shape index: {}]   ;;  %s329_s2 = inlined_call_operand.hbm [shape: f32[32,256], index: 2, kind: input, shape index: {}]   ;;  %s330_s3 = inlined_call_operand.vmem [shape: f32[1,256], index: 3, kind: input, shape index: {}]   ;;  %s331_s4 = inlined_call_operand.hbm [shape: f32[3,8,128], index: 4, kind: output, shape index: {}]  }
   0x1   :  { %10 = vsyncpa [#allocation6], 0 }
   0x2   :  { %11 = vsyncpa [#allocation4], 0  ;;  %s278_s15 = smov [#allocation5]   ;;  %s279_s17 = smov [#allocation2]  }
   0x3   :  { %s28_s16 = sshll.u32 %s278_s15, 4  ;;  %s18_s18 = sshll.u32 %s279_s17, 4  ;;  %s29_s16 = int_to_ptr.vmem [resolvable:$true] %s28_s16  ;;  %s19_s18 = int_to_ptr.vmem [resolvable:$true] %s18_s18 }
   0x4   :  { %s200_s19 = scalar_lea.vmem %s29_s16, 128  ;;  %p205_p1 = scmp.lt.s32.totalorder %s29_s16, %s29_s16 }
   0x5   :  { %p201_p0 = scmp.ne.s32.totalorder %s29_s16, %s200_s19  ;;  %p206_p2 = scmp.lt.s32.totalorder %s200_s19, %s200_s19 }
   0x7   :  { %p207_p3 = por %p206_p2, %p205_p1 }
   0x9   :  { %p208_p4 = pnand %p207_p3, %p201_p0 }
   0xb   :  { %211 = shalt.err (!%p208_p4)
}
   0xc   :  { %31 = dma.hbm_to_vmem [thread:$0]  %s328_s1, 128, %s29_s16, [#allocation6]  }
   0xd   :  { %s220_s22 = scalar_lea.vmem %s19_s18, 128  ;;  %p225_p6 = scmp.lt.s32.totalorder %s19_s18, %s19_s18 }
   0xe   :  { %p221_p5 = scmp.ne.s32.totalorder %s19_s18, %s220_s22  ;;  %p226_p7 = scmp.lt.s32.totalorder %s220_s22, %s220_s22 }
  0x10   :  { %p227_p8 = por %p226_p7, %p225_p6 }
  0x12   :  { %p228_p9 = pnand %p227_p8, %p221_p5 }
  0x14   :  { %231 = shalt.err (!%p228_p9)
}
  0x15   :  { %21 = dma.hbm_to_vmem [thread:$0]  %s327_s0, 128, %s19_s18, [#allocation3]  }
  0x16   :  { %s280_s25 = smov [#allocation7]  }
  0x17   :  { %s37_s26 = sshll.u32 %s280_s25, 4  ;;  %s38_s26 = int_to_ptr.vmem [resolvable:$true] %s37_s26 }
  0x18   :  { %s240_s27 = scalar_lea.vmem %s38_s26, 1024  ;;  %p245_p11 = scmp.lt.s32.totalorder %s38_s26, %s38_s26 }
  0x19   :  { %p241_p10 = scmp.ne.s32.totalorder %s38_s26, %s240_s27  ;;  %p246_p12 = scmp.lt.s32.totalorder %s240_s27, %s240_s27 }
  0x1b   :  { %p247_p13 = por %p246_p12, %p245_p11 }
  0x1d   :  { %p248_p0 = pnand %p247_p13, %p241_p10 }
  0x1f   :  { %251 = shalt.err (!%p248_p0)
}
  0x20   :  { %s281_s1 = smov 256   ;;  %s282_s28 = smov 16  }
  0x21   :  { %43 = dma.hbm_to_vmem [thread:$0]  %s329_s2, 1024, %s38_s26, [#allocation6], %s281_s1, %s281_s1, %s282_s28  }
  0x22   :  { %272 = dma.done.wait [#allocation3], 128  }
  0x23   :  { %273 = vsyncadd [#allocation3], 4294967168 }
  0x24   :  { %274 = dma.done.wait [#allocation6], 1152  }
  0x25   :  { %275 = vsyncadd [#allocation6], 4294966144  ;;  %v283_v0 = vmov 0.0   ;;  %v63_v1 = vld [vmem:[#allocation7 + $0x38] sm:$0xff]  ;;  %v62_v2 = vld [vmem:[#allocation7 + $0x30] sm:$0xff]  ;;  %vm76_vm0 = vcmask 261120   ;;  %v66_v10 = vlaneseq }
  0x26   :  { %144 = vmatprep.mubr.f32.mxu0 %v283_v0  ;;  %v61_v3 = vld [vmem:[#allocation7 + $0x28] sm:$0xff]  ;;  %104 = vmatprep.subr.mxu0 %v63_v1  ;;  %v60_v4 = vld [vmem:[#allocation7 + $0x20] sm:$0xff]  ;;  %v59_v5 = vld [vmem:[#allocation7 + $0x18] sm:$0xff]  ;;  %s284_s5 = smov [#allocation8]  }
  0x27   :  { %105 = vmatpush1.msra.mxu0 %v62_v2  ;;  %v58_v6 = vld [vmem:[#allocation7 + $0x10] sm:$0xff]  ;;  %v57_v7 = vld [vmem:[#allocation7 + $0x8] sm:$0xff]  ;;  %v56_v8 = vld [vmem:[#allocation7] sm:$0xff]  ;;  %v67_v11 = vshrl.u32 %v66_v10, 7  ;;  %s167_s6 = sshll.u32 %s284_s5, 4  ;;  %s168_s6 = int_to_ptr.vmem [resolvable:$true] %s167_s6 }
  0x28   :  { %106 = vmatprep.subr.mxu0 %v61_v3  ;;  %v55_v9 = vld [vmem:[#allocation2] sm:$0xff]  ;;  %v154_v23 = vld [vmem:[#allocation5] sm:$0xff]  ;;  %p257_p2 = scmp.lt.s32.totalorder %s168_s6, %s168_s6 }
  0x29   :  { %107 = vmatpush1.msra.mxu0 %v60_v4  ;;  %v68_v12 = vsub.s32 0, %v67_v11  ;;  %v64_v13 = vld [vmem:[%s330_s3] sm:$0x3]  ;;  %v72_v14 = vsub.s32 1, %v67_v11  ;;  %s252_s3 = scalar_lea.vmem %s168_s6, 384 }
  0x2a   :  { %108 = vmatprep.subr.mxu0 %v59_v5  ;;  %p253_p1 = scmp.ne.s32.totalorder %s168_s6, %s252_s3  ;;  %p258_p3 = scmp.lt.s32.totalorder %s252_s3, %s252_s3 }
  0x2b   :  { %109 = vmatpush1.msra.mxu0 %v58_v6  ;;  %v69_v15 = vrot.slane %v64_v13, %v68_v12  ;;  %v73_v16 = vrot.slane %v64_v13, %v72_v14 }
  0x2c   :  { %110 = vmatprep.subr.mxu0 %v57_v7  ;;  %p259_p4 = por %p258_p3, %p257_p2 }
  0x2d   :  { %111 = vmatpush1.msra.mxu0 %v56_v8 }
  0x2e   :  { %180 = vmatmul.mubr.msk.f32.vlgmr.msra.gmra.mxu0 %vm76_vm0, %v55_v9  ;;  %p260_p5 = pnand %p259_p4, %p253_p1 }
  0xee   :  { %v146_v17 = vpop.f32.mrf.mxu0 }
  0xef   :  { %v147_v18 = vadd.f32 %v146_v17, %v69_v15 }
  0xf0   :  { %v148_v19 = vpop.f32.mrf.mxu0 }
  0xf1   :  { %159 = vst [vmem:[#allocation8 + $0x8] sm:$0xff] %v147_v18  ;;  %v149_v20 = vadd.f32 %v148_v19, %v73_v16 }
  0xf3   :  { %v151_v21 = vmul.f32 0.5, %v149_v20  ;;  %161 = vst [vmem:[#allocation8 + $0x10] sm:$0xff] %v149_v20 }
  0xf5   :  { %v152_v22 = vmul.f32 1.442695, %v151_v21 }
  0xf7   :  { %190 = vpow2.f32 %v152_v22 }
 0x104   :  { %v191_v24 = vpop.eup %190 }
 0x105   :  { %v155_v25 = vmul.f32 %v191_v24, %v154_v23 }
 0x107   :  { %v156_v26 = vadd.f32 %v155_v25, %v147_v18 }
 0x109   :  { %157 = vst [vmem:[#allocation8] sm:$0xff] %v156_v26 }
 0x10a   :  { %263 = shalt.err (!%p260_p5)
}
 0x10b   :  { %s285_s7 = smov 128   ;;  %s286_s8 = smov 8  }
 0x10c   :  { %173 = dma.vmem_to_hbm [thread:$0]  %s168_s6, 384, %s331_s4, [#allocation4], %s285_s7, %s285_s7, %s286_s8  }
 0x10d   :  { %276 = dma.done.wait [#allocation4], 384  }
 0x10e   :  { %277 = vsyncadd [#allocation4], 4294966912 }
 0x10f   :  { %177 = vsyncpa [#allocation3], 1 }
 0x110   :  { %178 = vsyncpa [#allocation6], 1 }
 0x111   :  { %179 = vsyncpa [#allocation4], 1 }

</bundles_post_ra>
